<compile_context>
chip_gen: v7x
topology: tpu7x:2x2x1
jax: 0.10.0
libtpu: 0.0.40
codegen_flags: <defaults>
</compile_context>

<pallas_src>
import functools
import math

import jax
import jax.numpy as jnp
from jax import lax
from jax.experimental import pallas as pl
from jax.experimental.pallas import tpu as pltpu


# ----------------------------------------------------------------------------
# Generation-aware VMEM limit & tiling helpers
# ----------------------------------------------------------------------------
def _vmem_limit_bytes():
    """Scoped-VMEM limit with headroom under the physical capacity."""
    try:
        cap = int(pltpu.get_tpu_info().vmem_capacity_bytes)
    except Exception:
        cap = 64 * 1024 * 1024          # conservative default (v7x physical)
    return max(32 * 1024 * 1024, min(96 * 1024 * 1024, (cap * 3) // 4))


VMEM_LIMIT = _vmem_limit_bytes()

TM_CAP = 512     # rows per block
TK_CAP = 512     # contraction depth per block
TF_CAP = 1024    # d_ff tile in the fused FFN


def _pick_tile(dim, cap, multiple=8):
    """Largest divisor of `dim` <= cap, preferring multiples of `multiple`
    (sublane/lane alignment).  Never returns the raw full dim when dim > cap
    unless dim has no divisor <= cap at all."""
    if dim <= cap:
        return dim
    fallback = None
    for t in range(cap, 0, -1):
        if dim % t == 0:
            if t % multiple == 0:
                return t
            if fallback is None:
                fallback = t
    # TODO(synk): masked-tail path for prime-ish dims; correctness-preserving
    # but may create a large block for pathological sizes.
    return fallback if fallback is not None else dim


def _ln_f32(z, g, b, eps):
    mu = jnp.mean(z, axis=-1, keepdims=True)
    var = jnp.mean((z - mu) ** 2, axis=-1, keepdims=True)
    zn = (z - mu) * lax.rsqrt(var + eps)
    return zn * g.astype(jnp.float32) + b.astype(jnp.float32)


# ----------------------------------------------------------------------------
# Kernel 1: fused QKV projection + full multi-head self-attention
#           one batch per grid step; heads unrolled with per-head stores.
# ----------------------------------------------------------------------------
def attn_qkv_kernel(x_ref, wqkv_ref, bqkv_ref, o_ref, *, n_heads, scale):
    x = x_ref[0]                                              # (L, D) f32
    qkv = jnp.dot(x.astype(jnp.bfloat16), wqkv_ref[...],
                  preferred_element_type=jnp.float32)
    qkv = qkv + bqkv_ref[...].astype(jnp.float32)             # (L, 3D) f32
    d3 = qkv.shape[-1]
    d = d3 // 3
    e = d // n_heads
    kv_b = qkv.astype(jnp.bfloat16)                           # bf16 MXU copy
    for h in range(n_heads):                                  # static unroll
        # fold 1/sqrt(E) into q: L*E VPU ops instead of L*L on the scores
        q = (qkv[:, h * e:(h + 1) * e] * scale).astype(jnp.bfloat16)
        k = kv_b[:, d + h * e:d + (h + 1) * e]
        v = kv_b[:, 2 * d + h * e:2 * d + (h + 1) * e]
        s = lax.dot_general(q, k, (((1,), (1,)), ((), ())),
                            preferred_element_type=jnp.float32)   # (L, L)
        m = jnp.max(s, axis=-1, keepdims=True)
        p = jnp.exp(s - m)
        l = jnp.sum(p, axis=-1, keepdims=True)
        o = jnp.dot(p.astype(jnp.bfloat16), v,
                    preferred_element_type=jnp.float32)
        # per-head store into the output block: bounds live ranges, no concat
        o_ref[0, :, h * e:(h + 1) * e] = (
            o * pl.reciprocal(l, approx=True)).astype(o_ref.dtype)


def fused_qkv_attention(x, wqkv, bqkv, n_heads, scale):
    B, L, D = x.shape
    D3 = wqkv.shape[1]
    return pl.pallas_call(
        functools.partial(attn_qkv_kernel, n_heads=n_heads, scale=scale),
        out_shape=jax.ShapeDtypeStruct((B, L, D), jnp.bfloat16),
        grid=(B,),
        in_specs=[pl.BlockSpec((1, L, D), lambda b: (b, 0, 0)),
                  pl.BlockSpec((D, D3), lambda b: (0, 0)),
                  pl.BlockSpec((1, D3), lambda b: (0, 0))],
        out_specs=pl.BlockSpec((1, L, D), lambda b: (b, 0, 0)),
        compiler_params=pltpu.CompilerParams(
            dimension_semantics=("parallel",),
            vmem_limit_bytes=VMEM_LIMIT),
    )(x, wqkv, bqkv)


# ----------------------------------------------------------------------------
# Kernel 2: output projection + residual add + LayerNorm (epilogue-fused)
#           o = LN((x @ w + b) + resid),  w pre-cast to bf16, f32 accumulate
# ----------------------------------------------------------------------------
def matmul_res_ln_kernel(x_ref, w_ref, b_ref, r_ref, g_ref, bb_ref, o_ref,
                         acc_ref, *, eps):
    @pl.when(pl.program_id(1) == 0)
    def _():
        acc_ref[...] = jnp.zeros_like(acc_ref)

    acc_ref[...] += jnp.dot(x_ref[...].astype(jnp.bfloat16), w_ref[...],
                            preferred_element_type=jnp.float32)

    @pl.when(pl.program_id(1) == pl.num_programs(1) - 1)
    def _():
        z = (acc_ref[...] + b_ref[...].astype(jnp.float32)
             + r_ref[...].astype(jnp.float32))
        o_ref[...] = _ln_f32(z, g_ref[...], bb_ref[...], eps).astype(o_ref.dtype)


def matmul_res_ln(x, w, b, resid, gamma, beta, eps=1e-5):
    M, K = x.shape
    N = w.shape[1]
    tm = _pick_tile(M, TM_CAP, multiple=8)
    tk = _pick_tile(K, TK_CAP, multiple=128)
    return pl.pallas_call(
        functools.partial(matmul_res_ln_kernel, eps=eps),
        out_shape=jax.ShapeDtypeStruct((M, N), jnp.float32),
        grid=(M // tm, K // tk),
        in_specs=[pl.BlockSpec((tm, tk), lambda i, k: (i, k)),
                  pl.BlockSpec((tk, N), lambda i, k: (k, 0)),
                  pl.BlockSpec((1, N), lambda i, k: (0, 0)),
                  pl.BlockSpec((tm, N), lambda i, k: (i, 0)),
                  pl.BlockSpec((1, N), lambda i, k: (0, 0)),
                  pl.BlockSpec((1, N), lambda i, k: (0, 0))],
        out_specs=pl.BlockSpec((tm, N), lambda i, k: (i, 0)),
        scratch_shapes=[pltpu.VMEM((tm, N), jnp.float32)],
        compiler_params=pltpu.CompilerParams(
            dimension_semantics=("parallel", "arbitrary"),
            vmem_limit_bytes=VMEM_LIMIT),
    )(x, w, b, resid, gamma, beta)


# ----------------------------------------------------------------------------
# Kernel 3: fused FFN + residual + LayerNorm (+ optional fused final LN)
#           o = [finalLN](LN(x + relu(x @ w1 + b1) @ w2 + b2))
# The (tm, tf) intermediate lives only in VMEM; d_ff is tiled on the grid.
# ----------------------------------------------------------------------------
def ffn_res_ln_kernel(x_ref, w1_ref, b1_ref, w2_ref, b2_ref, g_ref, bb_ref,
                      *rest, eps, final_norm):
    if final_norm:
        fg_ref, fb_ref, o_ref, acc_ref = rest
    else:
        fg_ref = fb_ref = None
        o_ref, acc_ref = rest

    @pl.when(pl.program_id(1) == 0)
    def _():
        acc_ref[...] = jnp.zeros_like(acc_ref)

    h = jnp.dot(x_ref[...].astype(jnp.bfloat16), w1_ref[...],
                preferred_element_type=jnp.float32)
    h = jnp.maximum(h + b1_ref[...].astype(jnp.float32), 0.0)
    acc_ref[...] += jnp.dot(h.astype(jnp.bfloat16), w2_ref[...],
                            preferred_element_type=jnp.float32)

    @pl.when(pl.program_id(1) == pl.num_programs(1) - 1)
    def _():
        z = (acc_ref[...] + b2_ref[...].astype(jnp.float32)
             + x_ref[...].astype(jnp.float32))
        z = _ln_f32(z, g_ref[...], bb_ref[...], eps)
        if final_norm:
            z = _ln_f32(z, fg_ref[...], fb_ref[...], eps)
        o_ref[...] = z.astype(o_ref.dtype)


def ffn_res_ln(x, w1, b1, w2, b2, gamma, beta,
               final_gamma=None, final_beta=None, eps=1e-5):
    M, D = x.shape
    F = w1.shape[1]
    tm = _pick_tile(M, TM_CAP, multiple=8)
    tf = _pick_tile(F, TF_CAP, multiple=128)
    final_norm = final_gamma is not None
    row_spec = pl.BlockSpec((1, D), lambda i, f: (0, 0))
    in_specs = [pl.BlockSpec((tm, D), lambda i, f: (i, 0)),
                pl.BlockSpec((D, tf), lambda i, f: (0, f)),
                pl.BlockSpec((1, tf), lambda i, f: (0, f)),
                pl.BlockSpec((tf, D), lambda i, f: (f, 0)),
                row_spec, row_spec, row_spec]
    args = [x, w1, b1, w2, b2, gamma, beta]
    if final_norm:
        in_specs += [row_spec, row_spec]
        args += [final_gamma, final_beta]
    return pl.pallas_call(
        functools.partial(ffn_res_ln_kernel, eps=eps, final_norm=final_norm),
        out_shape=jax.ShapeDtypeStruct((M, D), jnp.float32),
        grid=(M // tm, F // tf),
        in_specs=in_specs,
        out_specs=pl.BlockSpec((tm, D), lambda i, f: (i, 0)),
        scratch_shapes=[pltpu.VMEM((tm, D), jnp.float32)],
        compiler_params=pltpu.CompilerParams(
            dimension_semantics=("parallel", "arbitrary"),
            vmem_limit_bytes=VMEM_LIMIT),
    )(*args)


# ----------------------------------------------------------------------------
# Kernel 4: standalone LayerNorm (only used when there are zero layers)
# ----------------------------------------------------------------------------
def ln_kernel(x_ref, g_ref, b_ref, o_ref, *, eps):
    o_ref[...] = _ln_f32(x_ref[...].astype(jnp.float32),
                         g_ref[...], b_ref[...], eps).astype(o_ref.dtype)


def layernorm(x, gamma, beta, eps=1e-5):
    M, D = x.shape
    tm = _pick_tile(M, TM_CAP, multiple=8)
    return pl.pallas_call(
        functools.partial(ln_kernel, eps=eps),
        out_shape=jax.ShapeDtypeStruct((M, D), jnp.float32),
        grid=(M // tm,),
        in_specs=[pl.BlockSpec((tm, D), lambda i: (i, 0)),
                  pl.BlockSpec((1, D), lambda i: (0, 0)),
                  pl.BlockSpec((1, D), lambda i: (0, 0))],
        out_specs=pl.BlockSpec((tm, D), lambda i: (i, 0)),
        compiler_params=pltpu.CompilerParams(
            dimension_semantics=("parallel",),
            vmem_limit_bytes=VMEM_LIMIT),
    )(x, gamma, beta)


# ----------------------------------------------------------------------------
# Decoder forward (glue in plain JAX, hot paths in Pallas)
# ----------------------------------------------------------------------------
def prepare_params_for_tpu(params):
    """Pre-cast all matmul weights to bf16 once (done outside the hot loop)."""
    def prep(p):
        q = dict(p)
        for k in ("wqkv", "wo", "w1", "w2"):
            q[k] = p[k].astype(jnp.bfloat16)
        return q
    out = {"layers": [prep(p) for p in params["layers"]]}
    if "norm_g" in params:
        out["norm_g"] = params["norm_g"]
        out["norm_b"] = params["norm_b"]
    return out


def decoder_layer_forward(x, p, n_heads, final_g=None, final_b=None):
    B, L, D = x.shape
    E = D // n_heads
    x2 = x.reshape(B * L, D)

    # fused QKV projection + self-attention (no (M,3D) HBM round trip)
    attn_out = fused_qkv_attention(x, p["wqkv"], p["bqkv"], n_heads,
                                   1.0 / math.sqrt(E))          # (B, L, D) bf16

    # output projection + residual + norm1, fused epilogue
    x1 = matmul_res_ln(attn_out.reshape(B * L, D), p["wo"], p["bo"],
                       x2, p["g1"], p["b1"])                    # (M, D) f32

    # FFN + residual + norm2 (+ final norm on the last layer), fully fused
    out = ffn_res_ln(x1, p["w1"], p["bf1"], p["w2"], p["bf2"],
                     p["g2"], p["b2"],
                     final_gamma=final_g, final_beta=final_b)   # (M, D) f32
    return out.reshape(B, L, D)


def decoder_forward(x, params, n_heads):
    # x_mask / cross_mask = None path (see TODO at top of file)
    layers = params["layers"]
    has_norm = "norm_g" in params
    n = len(layers)
    for li, p in enumerate(layers):
        last = li == n - 1
        decoder_layer_kwargs = {}
        if last and has_norm:
            decoder_layer_kwargs = dict(final_g=params["norm_g"],
                                        final_b=params["norm_b"])
        x = decoder_layer_forward(x, p, n_heads, **decoder_layer_kwargs)
    if n == 0 and has_norm:
        B, L, D = x.shape
        x = layernorm(x.reshape(B * L, D),
                      params["norm_g"], params["norm_b"]).reshape(B, L, D)
    return x


# ----------------------------------------------------------------------------
# Pure-JAX f32 reference (for validation)
# ----------------------------------------------------------------------------
def _ln_ref(z, g, b, eps=1e-5):
    mu = jnp.mean(z, axis=-1, keepdims=True)
    var = jnp.mean((z - mu) ** 2, axis=-1, keepdims=True)
    return (z - mu) / jnp.sqrt(var + eps) * g + b


def decoder_forward_ref(x, params, n_heads):
    B, L, D = x.shape
    E = D // n_heads
    for p in params["layers"]:
        x2 = x.reshape(B * L, D)
        qkv = x2 @ p["wqkv"] + p["bqkv"]
        q = qkv[:, :D].reshape(B, L, n_heads, E)
        k = qkv[:, D:2 * D].reshape(B, L, n_heads, E)
        v = qkv[:, 2 * D:].reshape(B, L, n_heads, E)
        s = jnp.einsum("blhe,bshe->bhls", q, k) / math.sqrt(E)
        a = jax.nn.softmax(s, axis=-1)
        o = jnp.einsum("bhls,bshd->blhd", a, v).reshape(B * L, D)
        new_x = o @ p["wo"] + p["bo"]
        x1 = _ln_ref(x2 + new_x, p["g1"], p["b1"])
        y = jnp.maximum(x1 @ p["w1"] + p["bf1"], 0.0)
        y = y @ p["w2"] + p["bf2"]
        x = _ln_ref(x1 + y, p["g2"], p["b2"]).reshape(B, L, D)
    x2 = x.reshape(B * L, D)
    return _ln_ref(x2, params["norm_g"], params["norm_b"]).reshape(B, L, D)


# ----------------------------------------------------------------------------
# Deterministic parameter init + main
# ----------------------------------------------------------------------------
def init_params(key, n_layers, d_model, d_ff):
    params = {"layers": []}
    for li in range(n_layers):
        keys = jax.random.split(jax.random.fold_in(key, li), 6)
        wq = 0.1 * jax.random.normal(keys[0], (d_model, d_model), jnp.float32)
        wk = 0.1 * jax.random.normal(keys[1], (d_model, d_model), jnp.float32)
        wv = 0.1 * jax.random.normal(keys[2], (d_model, d_model), jnp.float32)
        p = {
            "wqkv": jnp.concatenate([wq, wk, wv], axis=1),        # (D, 3D)
            "bqkv": jnp.zeros((1, 3 * d_model), jnp.float32),
            "wo": 0.1 * jax.random.normal(keys[3], (d_model, d_model), jnp.float32),
            "bo": jnp.zeros((1, d_model), jnp.float32),
            "w1": 0.1 * jax.random.normal(keys[4], (d_model, d_ff), jnp.float32),
            "bf1": jnp.zeros((1, d_ff), jnp.float32),
            "w2": 0.1 * jax.random.normal(keys[5], (d_ff, d_model), jnp.float32),
            "bf2": jnp.zeros((1, d_model), jnp.float32),
            "g1": jnp.ones((1, d_model), jnp.float32),
            "b1": jnp.zeros((1, d_model), jnp.float32),
            "g2": jnp.ones((1, d_model), jnp.float32),
            "b2": jnp.zeros((1, d_model), jnp.float32),
        }
        params["layers"].append(p)
    params["norm_g"] = jnp.ones((1, d_model), jnp.float32)
    params["norm_b"] = jnp.zeros((1, d_model), jnp.float32)
    return params


if __name__ == "__main__":
    B, L, d_model, n_heads, d_ff, n_layers = 2, 8, 32, 4, 64, 2
    key = jax.random.PRNGKey(0)
    kx, kp = jax.random.split(key)
    x = jax.random.normal(kx, (B, L, d_model), jnp.float32)
    params = init_params(kp, n_layers, d_model, d_ff)
    tpu_params = prepare_params_for_tpu(params)

    out = decoder_forward(x, tpu_params, n_heads)
    out = jax.block_until_ready(out)

    ref = decoder_forward_ref(x, params, n_heads)
    assert out.shape == (B, L, d_model)
    # bf16 MXU inputs + approx reciprocal => looser tolerance vs f32 reference
    assert jnp.allclose(out, ref, atol=5e-2, rtol=5e-2), "mismatch vs reference"

    print("KERNEL_OK")
</pallas_src>

<mosaic_0001>
module attributes {stable_mosaic.version = 11 : i64} {
  func.func @attn_qkv_kernel(%arg0: i32, %arg1: memref<1x8x32xf32, #tpu.memory_space<vmem>>, %arg2: memref<32x96xbf16, #tpu.memory_space<vmem>>, %arg3: memref<1x96xf32, #tpu.memory_space<vmem>>, %arg4: memref<1x8x32xbf16, #tpu.memory_space<vmem>>) attributes {dimension_semantics = [#tpu.dimension_semantics<parallel>], iteration_bounds = array<i64: 2>, scalar_prefetch = 0 : i64, scratch_operands = 0 : i64, tpu.core_type = #tpu.core_type<tc>, window_params = [{transform_indices = @transform_0, window_bounds = array<i64: 1, 8, 32>}, {pipeline_mode = #tpu.pipeline_mode<synchronous>, transform_indices = @transform_1, window_bounds = array<i64: 32, 96>}, {pipeline_mode = #tpu.pipeline_mode<synchronous>, transform_indices = @transform_2, window_bounds = array<i64: 1, 96>}, {transform_indices = @transform_3, window_bounds = array<i64: 1, 8, 32>}]} {
    %c0 = arith.constant 0 : index
    %c0_0 = arith.constant 0 : index
    %c0_1 = arith.constant 0 : index
    %0 = vector.load %arg1[%c0, %c0_0, %c0_1] : memref<1x8x32xf32, #tpu.memory_space<vmem>>, vector<1x8x32xf32>
    %1 = vector.shape_cast %0 : vector<1x8x32xf32> to vector<8x32xf32>
    %2 = arith.truncf %1 : vector<8x32xf32> to vector<8x32xbf16>
    %c0_2 = arith.constant 0 : index
    %c0_3 = arith.constant 0 : index
    %3 = vector.load %arg2[%c0_2, %c0_3] : memref<32x96xbf16, #tpu.memory_space<vmem>>, vector<32x96xbf16>
    %cst = arith.constant dense<0.000000e+00> : vector<8x96xf32>
    %4 = tpu.matmul %2, %3, %cst {dimension_numbers = #tpu.dot_dimension_numbers<[1], [0], [0], [1], [0, 0, 1, 1], [], []>} : vector<8x32xbf16>, vector<32x96xbf16>, vector<8x96xf32> -> vector<8x96xf32>
    %c0_4 = arith.constant 0 : index
    %c0_5 = arith.constant 0 : index
    %5 = vector.load %arg3[%c0_4, %c0_5] : memref<1x96xf32, #tpu.memory_space<vmem>>, vector<1x96xf32>
    %6 = vector.broadcast %5 : vector<1x96xf32> to vector<8x96xf32>
    %7 = arith.addf %4, %6 : vector<8x96xf32>
    %8 = arith.truncf %7 : vector<8x96xf32> to vector<8x96xbf16>
    %9 = vector.extract_strided_slice %7 {offsets = [0, 0], sizes = [8, 8], strides = [1, 1]} : vector<8x96xf32> to vector<8x8xf32>
    %cst_6 = arith.constant 0.353553385 : f32
    %10 = vector.broadcast %cst_6 : f32 to vector<8x8xf32>
    %11 = arith.mulf %9, %10 : vector<8x8xf32>
    %12 = arith.truncf %11 : vector<8x8xf32> to vector<8x8xbf16>
    %13 = vector.extract_strided_slice %8 {offsets = [0, 32], sizes = [8, 8], strides = [1, 1]} : vector<8x96xbf16> to vector<8x8xbf16>
    %14 = vector.extract_strided_slice %8 {offsets = [0, 64], sizes = [8, 8], strides = [1, 1]} : vector<8x96xbf16> to vector<8x8xbf16>
    %cst_7 = arith.constant dense<0.000000e+00> : vector<8x8xf32>
    %15 = tpu.matmul %12, %13, %cst_7 {dimension_numbers = #tpu.dot_dimension_numbers<[1], [1], [0], [0], [0, 0, 1, 0], [], []>} : vector<8x8xbf16>, vector<8x8xbf16>, vector<8x8xf32> -> vector<8x8xf32>
    %cst_8 = arith.constant dense<0xFF800000> : vector<8xf32>
    %16 = vector.multi_reduction <maximumf>, %15, %cst_8 [1] : vector<8x8xf32> to vector<8xf32>
    %17 = vector.shape_cast %16 : vector<8xf32> to vector<8x1xf32>
    %18 = vector.broadcast %17 : vector<8x1xf32> to vector<8x8xf32>
    %19 = arith.subf %15, %18 : vector<8x8xf32>
    %20 = math.exp %19 : vector<8x8xf32>
    %cst_9 = arith.constant dense<0.000000e+00> : vector<8xf32>
    %21 = vector.multi_reduction <add>, %20, %cst_9 [1] : vector<8x8xf32> to vector<8xf32>
    %22 = vector.shape_cast %21 : vector<8xf32> to vector<8x1xf32>
    %23 = arith.truncf %20 : vector<8x8xf32> to vector<8x8xbf16>
    %cst_10 = arith.constant dense<0.000000e+00> : vector<8x8xf32>
    %24 = tpu.matmul %23, %14, %cst_10 {dimension_numbers = #tpu.dot_dimension_numbers<[1], [0], [0], [1], [0, 0, 1, 1], [], []>} : vector<8x8xbf16>, vector<8x8xbf16>, vector<8x8xf32> -> vector<8x8xf32>
    %25 = tpu.reciprocal %22 {approx = true} : vector<8x1xf32> -> vector<8x1xf32>
    %26 = vector.broadcast %25 : vector<8x1xf32> to vector<8x8xf32>
    %27 = arith.mulf %24, %26 : vector<8x8xf32>
    %28 = arith.truncf %27 : vector<8x8xf32> to vector<8x8xbf16>
    %c0_11 = arith.constant 0 : index
    %c0_12 = arith.constant 0 : index
    %c0_13 = arith.constant 0 : index
    %29 = vector.load %arg4[%c0_11, %c0_12, %c0_13] : memref<1x8x32xbf16, #tpu.memory_space<vmem>>, vector<1x8x8xbf16>
    %30 = vector.shape_cast %29 : vector<1x8x8xbf16> to vector<8x8xbf16>
    %31 = vector.shape_cast %28 : vector<8x8xbf16> to vector<1x8x8xbf16>
    tpu.vector_store %arg4[%c0_11, %c0_12, %c0_13], %31 {strides = array<i32>} : memref<1x8x32xbf16, #tpu.memory_space<vmem>>, vector<1x8x8xbf16>,
    %32 = vector.extract_strided_slice %7 {offsets = [0, 8], sizes = [8, 8], strides = [1, 1]} : vector<8x96xf32> to vector<8x8xf32>
    %cst_14 = arith.constant 0.353553385 : f32
    %33 = vector.broadcast %cst_14 : f32 to vector<8x8xf32>
    %34 = arith.mulf %32, %33 : vector<8x8xf32>
    %35 = arith.truncf %34 : vector<8x8xf32> to vector<8x8xbf16>
    %36 = vector.extract_strided_slice %8 {offsets = [0, 40], sizes = [8, 8], strides = [1, 1]} : vector<8x96xbf16> to vector<8x8xbf16>
    %37 = vector.extract_strided_slice %8 {offsets = [0, 72], sizes = [8, 8], strides = [1, 1]} : vector<8x96xbf16> to vector<8x8xbf16>
    %cst_15 = arith.constant dense<0.000000e+00> : vector<8x8xf32>
    %38 = tpu.matmul %35, %36, %cst_15 {dimension_numbers = #tpu.dot_dimension_numbers<[1], [1], [0], [0], [0, 0, 1, 0], [], []>} : vector<8x8xbf16>, vector<8x8xbf16>, vector<8x8xf32> -> vector<8x8xf32>
    %cst_16 = arith.constant dense<0xFF800000> : vector<8xf32>
    %39 = vector.multi_reduction <maximumf>, %38, %cst_16 [1] : vector<8x8xf32> to vector<8xf32>
    %40 = vector.shape_cast %39 : vector<8xf32> to vector<8x1xf32>
    %41 = vector.broadcast %40 : vector<8x1xf32> to vector<8x8xf32>
    %42 = arith.subf %38, %41 : vector<8x8xf32>
    %43 = math.exp %42 : vector<8x8xf32>
    %cst_17 = arith.constant dense<0.000000e+00> : vector<8xf32>
    %44 = vector.multi_reduction <add>, %43, %cst_17 [1] : vector<8x8xf32> to vector<8xf32>
    %45 = vector.shape_cast %44 : vector<8xf32> to vector<8x1xf32>
    %46 = arith.truncf %43 : vector<8x8xf32> to vector<8x8xbf16>
    %cst_18 = arith.constant dense<0.000000e+00> : vector<8x8xf32>
    %47 = tpu.matmul %46, %37, %cst_18 {dimension_numbers = #tpu.dot_dimension_numbers<[1], [0], [0], [1], [0, 0, 1, 1], [], []>} : vector<8x8xbf16>, vector<8x8xbf16>, vector<8x8xf32> -> vector<8x8xf32>
    %48 = tpu.reciprocal %45 {approx = true} : vector<8x1xf32> -> vector<8x1xf32>
    %49 = vector.broadcast %48 : vector<8x1xf32> to vector<8x8xf32>
    %50 = arith.mulf %47, %49 : vector<8x8xf32>
    %51 = arith.truncf %50 : vector<8x8xf32> to vector<8x8xbf16>
    %c0_19 = arith.constant 0 : index
    %c0_20 = arith.constant 0 : index
    %c8 = arith.constant 8 : index
    %52 = vector.load %arg4[%c0_19, %c0_20, %c8] : memref<1x8x32xbf16, #tpu.memory_space<vmem>>, vector<1x8x8xbf16>
    %53 = vector.shape_cast %52 : vector<1x8x8xbf16> to vector<8x8xbf16>
    %54 = vector.shape_cast %51 : vector<8x8xbf16> to vector<1x8x8xbf16>
    tpu.vector_store %arg4[%c0_19, %c0_20, %c8], %54 {strides = array<i32>} : memref<1x8x32xbf16, #tpu.memory_space<vmem>>, vector<1x8x8xbf16>,
    %55 = vector.extract_strided_slice %7 {offsets = [0, 16], sizes = [8, 8], strides = [1, 1]} : vector<8x96xf32> to vector<8x8xf32>
    %cst_21 = arith.constant 0.353553385 : f32
    %56 = vector.broadcast %cst_21 : f32 to vector<8x8xf32>
    %57 = arith.mulf %55, %56 : vector<8x8xf32>
    %58 = arith.truncf %57 : vector<8x8xf32> to vector<8x8xbf16>
    %59 = vector.extract_strided_slice %8 {offsets = [0, 48], sizes = [8, 8], strides = [1, 1]} : vector<8x96xbf16> to vector<8x8xbf16>
    %60 = vector.extract_strided_slice %8 {offsets = [0, 80], sizes = [8, 8], strides = [1, 1]} : vector<8x96xbf16> to vector<8x8xbf16>
    %cst_22 = arith.constant dense<0.000000e+00> : vector<8x8xf32>
    %61 = tpu.matmul %58, %59, %cst_22 {dimension_numbers = #tpu.dot_dimension_numbers<[1], [1], [0], [0], [0, 0, 1, 0], [], []>} : vector<8x8xbf16>, vector<8x8xbf16>, vector<8x8xf32> -> vector<8x8xf32>
    %cst_23 = arith.constant dense<0xFF800000> : vector<8xf32>
    %62 = vector.multi_reduction <maximumf>, %61, %cst_23 [1] : vector<8x8xf32> to vector<8xf32>
    %63 = vector.shape_cast %62 : vector<8xf32> to vector<8x1xf32>
    %64 = vector.broadcast %63 : vector<8x1xf32> to vector<8x8xf32>
    %65 = arith.subf %61, %64 : vector<8x8xf32>
    %66 = math.exp %65 : vector<8x8xf32>
    %cst_24 = arith.constant dense<0.000000e+00> : vector<8xf32>
    %67 = vector.multi_reduction <add>, %66, %cst_24 [1] : vector<8x8xf32> to vector<8xf32>
    %68 = vector.shape_cast %67 : vector<8xf32> to vector<8x1xf32>
    %69 = arith.truncf %66 : vector<8x8xf32> to vector<8x8xbf16>
    %cst_25 = arith.constant dense<0.000000e+00> : vector<8x8xf32>
    %70 = tpu.matmul %69, %60, %cst_25 {dimension_numbers = #tpu.dot_dimension_numbers<[1], [0], [0], [1], [0, 0, 1, 1], [], []>} : vector<8x8xbf16>, vector<8x8xbf16>, vector<8x8xf32> -> vector<8x8xf32>
    %71 = tpu.reciprocal %68 {approx = true} : vector<8x1xf32> -> vector<8x1xf32>
    %72 = vector.broadcast %71 : vector<8x1xf32> to vector<8x8xf32>
    %73 = arith.mulf %70, %72 : vector<8x8xf32>
    %74 = arith.truncf %73 : vector<8x8xf32> to vector<8x8xbf16>
    %c0_26 = arith.constant 0 : index
    %c0_27 = arith.constant 0 : index
    %c16 = arith.constant 16 : index
    %75 = vector.load %arg4[%c0_26, %c0_27, %c16] : memref<1x8x32xbf16, #tpu.memory_space<vmem>>, vector<1x8x8xbf16>
    %76 = vector.shape_cast %75 : vector<1x8x8xbf16> to vector<8x8xbf16>
    %77 = vector.shape_cast %74 : vector<8x8xbf16> to vector<1x8x8xbf16>
    tpu.vector_store %arg4[%c0_26, %c0_27, %c16], %77 {strides = array<i32>} : memref<1x8x32xbf16, #tpu.memory_space<vmem>>, vector<1x8x8xbf16>,
    %78 = vector.extract_strided_slice %7 {offsets = [0, 24], sizes = [8, 8], strides = [1, 1]} : vector<8x96xf32> to vector<8x8xf32>
    %cst_28 = arith.constant 0.353553385 : f32
    %79 = vector.broadcast %cst_28 : f32 to vector<8x8xf32>
    %80 = arith.mulf %78, %79 : vector<8x8xf32>
    %81 = arith.truncf %80 : vector<8x8xf32> to vector<8x8xbf16>
    %82 = vector.extract_strided_slice %8 {offsets = [0, 56], sizes = [8, 8], strides = [1, 1]} : vector<8x96xbf16> to vector<8x8xbf16>
    %83 = vector.extract_strided_slice %8 {offsets = [0, 88], sizes = [8, 8], strides = [1, 1]} : vector<8x96xbf16> to vector<8x8xbf16>
    %cst_29 = arith.constant dense<0.000000e+00> : vector<8x8xf32>
    %84 = tpu.matmul %81, %82, %cst_29 {dimension_numbers = #tpu.dot_dimension_numbers<[1], [1], [0], [0], [0, 0, 1, 0], [], []>} : vector<8x8xbf16>, vector<8x8xbf16>, vector<8x8xf32> -> vector<8x8xf32>
    %cst_30 = arith.constant dense<0xFF800000> : vector<8xf32>
    %85 = vector.multi_reduction <maximumf>, %84, %cst_30 [1] : vector<8x8xf32> to vector<8xf32>
    %86 = vector.shape_cast %85 : vector<8xf32> to vector<8x1xf32>
    %87 = vector.broadcast %86 : vector<8x1xf32> to vector<8x8xf32>
    %88 = arith.subf %84, %87 : vector<8x8xf32>
    %89 = math.exp %88 : vector<8x8xf32>
    %cst_31 = arith.constant dense<0.000000e+00> : vector<8xf32>
    %90 = vector.multi_reduction <add>, %89, %cst_31 [1] : vector<8x8xf32> to vector<8xf32>
    %91 = vector.shape_cast %90 : vector<8xf32> to vector<8x1xf32>
    %92 = arith.truncf %89 : vector<8x8xf32> to vector<8x8xbf16>
    %cst_32 = arith.constant dense<0.000000e+00> : vector<8x8xf32>
    %93 = tpu.matmul %92, %83, %cst_32 {dimension_numbers = #tpu.dot_dimension_numbers<[1], [0], [0], [1], [0, 0, 1, 1], [], []>} : vector<8x8xbf16>, vector<8x8xbf16>, vector<8x8xf32> -> vector<8x8xf32>
    %94 = tpu.reciprocal %91 {approx = true} : vector<8x1xf32> -> vector<8x1xf32>
    %95 = vector.broadcast %94 : vector<8x1xf32> to vector<8x8xf32>
    %96 = arith.mulf %93, %95 : vector<8x8xf32>
    %97 = arith.truncf %96 : vector<8x8xf32> to vector<8x8xbf16>
    %c0_33 = arith.constant 0 : index
    %c0_34 = arith.constant 0 : index
    %c24 = arith.constant 24 : index
    %98 = vector.load %arg4[%c0_33, %c0_34, %c24] : memref<1x8x32xbf16, #tpu.memory_space<vmem>>, vector<1x8x8xbf16>
    %99 = vector.shape_cast %98 : vector<1x8x8xbf16> to vector<8x8xbf16>
    %100 = vector.shape_cast %97 : vector<8x8xbf16> to vector<1x8x8xbf16>
    tpu.vector_store %arg4[%c0_33, %c0_34, %c24], %100 {strides = array<i32>} : memref<1x8x32xbf16, #tpu.memory_space<vmem>>, vector<1x8x8xbf16>,
    return
  }
  func.func @transform_0(%arg0: i32) -> (i32, i32, i32) {
    %c0_i32 = arith.constant 0 : i32
    %c0_i32_0 = arith.constant 0 : i32
    %c0_i32_1 = arith.constant 0 : i32
    return %arg0, %c0_i32, %c0_i32_0 : i32, i32, i32
  }
  func.func @transform_1(%arg0: i32) -> (i32, i32) {
    %c0_i32 = arith.constant 0 : i32
    %c0_i32_0 = arith.constant 0 : i32
    %c0_i32_1 = arith.constant 0 : i32
    return %c0_i32, %c0_i32_0 : i32, i32
  }
  func.func @transform_2(%arg0: i32) -> (i32, i32) {
    %c0_i32 = arith.constant 0 : i32
    %c0_i32_0 = arith.constant 0 : i32
    %c0_i32_1 = arith.constant 0 : i32
    return %c0_i32, %c0_i32_0 : i32, i32
  }
  func.func @transform_3(%arg0: i32) -> (i32, i32, i32) {
    %c0_i32 = arith.constant 0 : i32
    %c0_i32_0 = arith.constant 0 : i32
    %c0_i32_1 = arith.constant 0 : i32
    return %arg0, %c0_i32, %c0_i32_0 : i32, i32, i32
  }
}

</mosaic_0001>

<bundles_post_ra>
// kernel: tpu_custom_call.1
= control target key start
LH: loop header
LB: loop body
LE: loop exit
PB: predicated region body
PF: predicated region fallthrough
CT: control target
= control target key end

     0   :  { %8 = vsyncpa [#allocation3], 0  ;;  %s1480_s0 = inlined_call_operand.hbm [shape: f32[2,8,32], index: 0, kind: input, shape index: {}]   ;;  %s1481_s1 = inlined_call_operand.hbm [shape: bf16[32,96], index: 1, kind: input, shape index: {}]   ;;  %s1482_s2 = inlined_call_operand.vmem [shape: f32[1,96], index: 2, kind: input, shape index: {}]   ;;  %s1483_s3 = inlined_call_operand.hbm [shape: bf16[2,8,32], index: 3, kind: output, shape index: {}]  }
   0x1   :  { %10 = vsyncpa [#allocation3 + $0x1], 0 }
   0x2   :  { %11 = vsyncpa [#allocation6], 0 }
   0x3   :  { %12 = vsyncpa [#allocation4], 0 }
   0x4   :  { %14 = vsyncpa [#allocation4 + $0x1], 0  ;;  %s1211_s12 = smov 0   ;;  %s1213_s13 = smov 0  }
   0x5   :  { %s1215_s14 = smov 0   ;;  %s1217_s15 = smov 0  }
   0x6 LB: > { %s1232_s16 = sadd.s32 4294967295, %s1168_s15   ;;  %s840_s17 = sadd.s32 4294967294, %s1168_s15   ;;  %s1168_s15 = sphi %s1217_s15, %s1503_s15   ;;  %s1164_s14 = sphi %s1215_s14, %s1502_s14   ;;  %s1160_s13 = sphi %s1213_s13, %s1501_s13   ;;  %s1156_s12 = sphi %s1211_s12, %s1500_s12  }
   0x7   : > { %p40_p0 = scmp.ne.s32.totalorder %s1160_s13, %s1156_s12  ;;  %p1484_p1 = scmp.eq.s32.totalorder %s1232_s16, 0 }
   0x8   : > { %p112_p3 = scmp.eq.s32.totalorder %s840_s17, 1  ;;  %p841_p5 = scmp.ge.s32.totalorder %s1168_s15, 1 }
   0x9   : > { %p1241_p4 = por %p1484_p1, %p40_p0  ;;  %p119_p7 = scmp.lt.s32.totalorder %s1168_s15, 3 }
   0xa   : > { %p1246_p6 = por %p112_p3, %p40_p0  ;;  %s1170_s21 = smov [#allocation5]  }
   0xb   : > { %s1487_s18 = scalar_select %p1241_p4, 1, 0 }
   0xc   : > { %s1488_s19 = scalar_select %p1246_p6, 1, 0 }
   0xd   : > { %p1251_p8 = pnand %p841_p5, %p119_p7  ;;  %s131_s22 = sshll.u32 %s1170_s21, 4  ;;  %s1255_s22 = int_to_ptr.vmem [resolvable:$true] %s131_s22 }
   0xe   : > { %s1267_s24 = sadd.s32 1, %s1168_s15   ;;  %s27_s25 = sadd.s32 1, %s1164_s14 }
   0xf   : > { %s1489_s20 = scalar_select %p1251_p8, 1, 0 }
  0x10   : > { %p955_p9 = pneg %p1251_p8  ;;  %s24_s26 = ssub.s32 %s1168_s15, %s1267_s24 }
  0x11   : > { %s1040_s29 = scalar_lea.hbm %s1481_s1, 256 }
  0x12   : > { %p1262_p11 = pnand %p955_p9, %p1484_p1  ;;  %p1041_p12 = scmp.ne.s32.totalorder %s1481_s1, %s1040_s29 }
  0x13   : > { %p1047_p5 = scmp.lt.u32.totalorder %s1040_s29, %s1481_s1 }
  0x14   : > { %p1042_p13 = pneg %p1262_p11 }
  0x16   : > { %p1043_p0 = pnand %p1042_p13, %p1041_p12 }
  0x18   : > { %p1044_p3 = pneg %p1043_p0 }
  0x1a   : > { %p1049_p7 = pnand %p1047_p5, %p1044_p3 }
  0x1c   : > { %1052 = shalt.err (!%p1049_p7)
}
  0x1d   : > { %s1053_s7 = scalar_lea.vmem %s1255_s22, 256  ;;  %p1061_p2 = scmp.lt.s32.totalorder %s1255_s22, %s1255_s22 }
  0x1e   : > { %p1054_p9 = scmp.ne.s32.totalorder %s1255_s22, %s1053_s7  ;;  %p1062_p6 = scmp.lt.s32.totalorder %s1053_s7, %s1053_s7 }
  0x20   : > { %p1056_p10 = pnand %p1054_p9, %p1042_p13  ;;  %p1063_p4 = por %p1062_p6, %p1061_p2 }
  0x22   : > { %p1057_p1 = pneg %p1056_p10 }
  0x24   : > { %p1064_p8 = pnand %p1063_p4, %p1057_p1 }
  0x26   : > { %1067 = shalt.err (!%p1064_p8)
}
  0x27   : > { %s1171_s8 = smov 64   ;;  %s1172_s9 = smov 4  }
  0x28   : > { %958 = dma.hbm_to_vmem [thread:$0]  (!%p1262_p11), %s1481_s1, 256, %s1255_s22, [#allocation6], %s1171_s8, %s1171_s8, %s1172_s9  }
  0x29   : > { %p25_p2 = scmp.eq.s32.totalorder %s24_s26, 0  ;;  %p34_p1 = scmp.ne.s32.totalorder %s1164_s14, %s1160_s13 }
  0x2a   : > { %p35_p4 = scmp.eq.s32.totalorder %s1168_s15, 0  ;;  %p968_p6 = scmp.lt.s32.totalorder %s1168_s15, 2 }
  0x2b   : > { %s1298_s17 = scalar_select %p25_p2, %s1164_s14, %s27_s25  }
  0x2c   : > { %p36_p8 = por %p35_p4, %p34_p1  ;;  %p1491_p10 = scmp.eq.s32.totalorder %s1232_s16, 1 }
  0x2d   : > { %s148_s27 = sand.u32 1, %s1164_s14   ;;  %s845_s28 = sshll.u32 %s1168_s15, 7 }
  0x2e   : > { %p1302_p12 = por %p1491_p10, %p34_p1  ;;  %s844_s29 = sshll.u32 %s148_s27, 3 }
  0x2f   : > { %s1311_s4 = scalar_lea.hbm %s1480_s0, %s845_s28  ;;  %s152_s22 = scalar_lea.vmem [#allocation2], %s844_s29 }
  0x30   : > { %s159_s25 = sshll.u32 %s152_s22, 4  ;;  %p1313_p11 = pnand %p968_p6, %p36_p8  ;;  %s1317_s25 = int_to_ptr.vmem [resolvable:$true] %s159_s25 }
  0x31   : > { %s149_s5 = scalar_lea.sflag [#allocation3], %s148_s27  ;;  %s1068_s6 = scalar_lea.hbm %s1311_s4, 128 }
  0x32   : > { %p1069_p13 = scmp.ne.s32.totalorder %s1311_s4, %s1068_s6  ;;  %p1070_p0 = pneg %p1313_p11 }
  0x33   : > { %s1073_s9 = scalar_lea.hbm %s1480_s0, 256  ;;  %p1074_p7 = scmp.lt.u32.totalorder %s1311_s4, %s1480_s0 }
  0x34   : > { %p1071_p3 = pnand %p1070_p0, %p1069_p13  ;;  %p1075_p9 = scmp.lt.u32.totalorder %s1073_s9, %s1068_s6 }
  0x35   : > { %p1077_p1 = scmp.lt.u32.totalorder %s1068_s6, %s1311_s4 }
  0x36   : > { %p1072_p5 = pneg %p1071_p3  ;;  %p1076_p2 = por %p1075_p9, %p1074_p7 }
  0x38   : > { %p1078_p4 = por %p1077_p1, %p1076_p2 }
  0x3a   : > { %p1079_p6 = pnand %p1078_p4, %p1072_p5 }
  0x3c   : > { %1082 = shalt.err (!%p1079_p6)
}
  0x3d   : > { %s1083_s27 = scalar_lea.vmem %s1317_s25, 128  ;;  %s1173_s28 = smov [#allocation2]  }
  0x3e   : > { %p1084_p8 = scmp.ne.s32.totalorder %s1317_s25, %s1083_s27  ;;  %s1088_s29 = sshll.u32 %s1173_s28, 4  ;;  %s1089_s29 = int_to_ptr.vmem [resolvable:$false] %s1088_s29 }
  0x3f   : > { %s1090_s23 = scalar_lea.vmem %s1089_s29, 256  ;;  %p1091_p3 = scmp.lt.s32.totalorder %s1317_s25, %s1089_s29 }
  0x40   : > { %p1086_p10 = pnand %p1084_p8, %p1070_p0  ;;  %p1092_p7 = scmp.lt.s32.totalorder %s1090_s23, %s1083_s27 }
  0x42   : > { %p1087_p13 = pneg %p1086_p10  ;;  %p1093_p9 = por %p1092_p7, %p1091_p3 }
  0x44   : > { %p1094_p2 = pnand %p1093_p9, %p1087_p13 }
  0x46   : > { %1097 = shalt.err (!%p1094_p2)
}
  0x47   : > { %962 = dma.hbm_to_vmem [thread:$0]  (!%p1313_p11), %s1311_s4, 128, %s1317_s25, %s149_s5  }
  0x48   : > { %p1494_p5 = scmp.ne.s32.totalorder %s1489_s20, 0 }
  0x49   : > { %s1347_s30 = sand.u32 (!%p1494_p5), 1, %s1160_s13   ;;  %p1495_p0 = scmp.ne.s32.totalorder (!%p1494_p5), %s1487_s18, 0 }
  0x4a   : > { %168 = sbr.rel (%p1494_p5) target bundleno = 1204 (0x4b4), region = 32  ;;  %s847_s22 = sshll.u32 (!%p1494_p5), %s1347_s30, 3 }
  0x4b   : > { %s171_s6 = scalar_lea.sflag (!%p1494_p5), [#allocation3], %s1347_s30  ;;  %s174_s7 = scalar_lea.vmem (!%p1494_p5), [#allocation2], %s847_s22 }
  0x51   : > { %1143 = dma.done.wait (%p1495_p0), %s171_s6, 128  }
  0x52   : > { %1145 = vsyncadd (%p1495_p0), %s171_s6, 4294967168  ;;  %p1496_p1 = scmp.eq.s32.totalorder %s1232_s16, 0 }
  0x54   : > { %1147 = dma.done.wait (%p1496_p1), [#allocation6], 256   ;;  %p1497_p11 = pmov %p1496_p1 }
  0x55   : > { %v1174_v0 = vmov 0.0   ;;  %vm1175_vm0 = vmmov 0   ;;  %v1022_v1 = vld [vmem:[#allocation5] sm:$0xff]   ;;  %v1023_v2 = vld [vmem:[#allocation5 + $0x8] sm:$0xff]   ;;  %v202_v3 = vld [vmem:[%s174_s7] sm:$0xff]  ;;  %vm227_vm1 = vcmask 261120  }
  0x56   : > { %1149 = vsyncadd (%p1497_p11), [#allocation6], 4294967040  ;;  %891 = vmatprep.subr.bf16.mxu0 %v1174_v0  ;;  %895 = vmatprep.mubr.msk.bf16.mxu0 %vm1175_vm0, %v1174_v0  ;;  %v203_v4 = vpack.c.bf16 %v202_v3, %v202_v3  ;;  %v850_v5 = vld [vmem:[%s1482_s2] ss:$0 sm:$0xff]  ;;  %s1176_s4 = smov 96   ;;  %s1177_s25 = smov 120  }
  0x57   : > { %899 = vmatprep.subr.bf16.mxu1 %v1174_v0  ;;  %901 = vmatprep.mubr.msk.bf16.mxu1 %vm1175_vm0, %v1174_v0  ;;  %s1178_s26 = smov 88   ;;  %s1179_s5 = smov 80   ;;  %vm277_vm2 = vcmask 64512   ;;  %vm339_vm3 = vcmask 1043456   ;;  %vm386_vm4 = vcmask 60416   ;;  %vm506_vm5 = vcmask 126016  }
  0x58   : > { %892 = vmatpush3.bf16.msra.mxu0 %v1022_v1  ;;  %s1180_s8 = smov 112   ;;  %s1181_s9 = smov 72   ;;  %vm625_vm6 = vcmask 191616   ;;  %vm744_vm7 = vcmask 257216  }
  0x59   : > { %893 = vmatprep.subr.bf16.mxu0 %v1174_v0  ;;  %s1182_s10 = smov 104   ;;  %s1183_s11 = smov 56  }
  0x5a   : > { %s1184_s27 = smov 64   ;;  %s1185_s28 = smov 40  }
  0x5b   : > { %s1186_s29 = smov 48   ;;  %s849_s23 = sshll.u32 %s1347_s30, 2 }
  0x5c   : > { %894 = vmatpush3.bf16.msra.mxu0 %v1023_v2  ;;  %s1425_s22 = scalar_lea.vmem [#allocation7], %s849_s23  ;;  %s1187_s6 = smov 8  }
  0x5d   : > { %905 = vmatprep.subr.bf16.mxu0 %v1174_v0  ;;  %s1188_s7 = smov 16   ;;  %s1189_s18 = smov 24  }
  0x5e   : > { %s866_s20 = sshll.u32 %s1232_s16, 6  ;;  %s1190_s16 = smov [#allocation7]  }
  0x5f   : > { %896 = vmatmul.mubr.msk.bf16.vlgmr.msra.gmra.mrb[0].mxu0 %vm227_vm1, %v203_v4 }
  0x60   : > { %907 = vmatprep.mubr.msk.bf16.mxu0 %vm1175_vm0, %v1174_v0 }
 0x132   : > { %v265_v6 = vpop.f32.mrb[0].mxu0 }
 0x133   : > { %v266_v7 = vadd.f32 %v850_v5, %v265_v6  ;;  %v897_v8 = vpop.f32.mrb[1].mxu0 }
 0x134   : > { %v268_v9 = vpop.f32.mrb[2].mxu0 }
 0x135   : > { %v1372_v10 = vpack.c.bf16 %v266_v7, %v266_v7  ;;  %v272_v11 = vmul.f32 0.35355338, %v266_v7  ;;  %v898_v12 = vpop.f32.mrb[3].mxu0 }
 0x137   : > { %v273_v13 = vpack.c.bf16 %v272_v11, %v272_v11  ;;  %275 = vrot.lane.b32.xlu0 %v1372_v10, %s1176_s4  ;;  %s760_s4 = sshll.u32 %s1425_s22, 4  ;;  %s1437_s4 = int_to_ptr.vmem [resolvable:$true] %s760_s4 }
 0x139   : > { %389 = vrot.lane.b32.xlu1 %v273_v13, %s1177_s25 }
 0x13b   : > { %391 = vrot.lane.b32.xlu0 %v1372_v10, %s1178_s26 }
 0x13d   : > { %510 = vrot.lane.b32.xlu1 %v1372_v10, %s1179_s5  ;;  %s1435_s5 = scalar_lea.hbm %s1483_s3, %s866_s20 }
 0x13f   : > { %508 = vrot.lane.b32.xlu0 %v273_v13, %s1180_s8  ;;  %s747_s8 = scalar_lea.sflag [#allocation4], %s1347_s30 }
 0x141   : > { %629 = vrot.lane.b32.xlu1 %v1372_v10, %s1181_s9  ;;  %s1098_s9 = scalar_lea.vmem %s1437_s4, 64 }
 0x142   : > { %p1099_p4 = scmp.ne.s32.totalorder %s1437_s4, %s1098_s9 }
 0x143   : > { %627 = vrot.lane.b32.xlu0 %v273_v13, %s1182_s10  ;;  %s1102_s10 = sshll.u32 %s1190_s16, 4  ;;  %s1103_s10 = int_to_ptr.vmem [resolvable:$false] %s1102_s10 }
 0x144   : > { %p1100_p6 = pnand %p1099_p4, %p1302_p12  ;;  %p1105_p10 = scmp.lt.s32.totalorder %s1437_s4, %s1103_s10 }
 0x146   : > { %p1101_p8 = pneg %p1100_p6 }
 0x1a9   : > { %v276_v14 = vpop.permute.xlu0 %275 }
 0x1aa   : > { %v282_v15 = vsel %vm277_vm2, %v276_v14, 0 }
 0x1ab   : > { %900 = vmatpush3.bf16.xpose.msra.mxu1 %v282_v15  ;;  %v390_v17 = vpop.permute.xlu1 %389 }
 0x1ac   : > { %911 = vmatprep.subr.bf16.mxu1 %v1174_v0 }
 0x1ad   : > { %v392_v16 = vpop.permute.xlu0 %391 }
 0x1ae   : > { %v397_v18 = vsel %vm277_vm2, %v392_v16, 0 }
 0x1af   : > { %v511_v19 = vpop.permute.xlu1 %510 }
 0x1b0   : > { %v516_v20 = vsel %vm277_vm2, %v511_v19, 0 }
 0x1b1   : > { %v509_v22 = vpop.permute.xlu0 %508 }
 0x1b2   : > { %902 = vmatmul.mubr.msk.bf16.vlgmr.msra.gmra.mrb[0].mxu1 %vm277_vm2, %v273_v13 }
 0x1b3   : > { %912 = vmatpush3.bf16.xpose.msra.mxu1 %v397_v18  ;;  %913 = vmatprep.mubr.msk.bf16.mxu1 %vm1175_vm0, %v1174_v0  ;;  %v630_v21 = vpop.permute.xlu1 %629 }
 0x1b4   : > { %923 = vmatprep.subr.bf16.mxu1 %v1174_v0  ;;  %v635_v23 = vsel %vm277_vm2, %v630_v21, 0 }
 0x1b5   : > { %v628_v24 = vpop.permute.xlu0 %627 }
 0x1ba   : > { %914 = vmatmul.mubr.msk.bf16.vlgmr.msra.gmra.mrb[4].mxu1 %vm277_vm2, %v390_v17 }
 0x1bb   : > { %924 = vmatpush3.bf16.xpose.msra.mxu1 %v516_v20  ;;  %925 = vmatprep.mubr.msk.bf16.mxu1 %vm1175_vm0, %v1174_v0 }
 0x1bc   : > { %935 = vmatprep.subr.bf16.mxu1 %v1174_v0 }
 0x1c2   : > { %926 = vmatmul.mubr.msk.bf16.vlgmr.msra.gmra.mrb[8].mxu1 %vm277_vm2, %v509_v22 }
 0x1c3   : > { %936 = vmatpush3.bf16.xpose.msra.mxu1 %v635_v23  ;;  %937 = vmatprep.mubr.msk.bf16.mxu1 %vm1175_vm0, %v1174_v0 }
 0x1ca   : > { %938 = vmatmul.mubr.msk.bf16.vlgmr.msra.gmra.mrb[12].mxu1 %vm277_vm2, %v628_v24 }
 0x285   : > { %v318_v25 = vpop.f32.mrb[0].mxu1 }
 0x286   : > { %v903_v26 = vpop.f32.mrb[1].mxu1  ;;  %v324_v27 = vsel %vm277_vm2, %v318_v25, -inf }
 0x287   : > { %325 = vmax.xlane.f32.xlu1 %v324_v27  ;;  %v321_v28 = vpop.f32.mrb[2].mxu1 }
 0x288   : > { %v904_v29 = vpop.f32.mrb[3].mxu1 }
 0x28d   : > { %v433_v30 = vpop.f32.mrb[4].mxu1 }
 0x28e   : > { %v915_v31 = vpop.f32.mrb[5].mxu1  ;;  %v439_v32 = vsel %vm277_vm2, %v433_v30, -inf }
 0x28f   : > { %440 = vmax.xlane.f32.xlu0 %v439_v32  ;;  %v436_v33 = vpop.f32.mrb[6].mxu1 }
 0x290   : > { %v916_v34 = vpop.f32.mrb[7].mxu1 }
 0x295   : > { %v552_v35 = vpop.f32.mrb[8].mxu1 }
 0x296   : > { %v927_v36 = vpop.f32.mrb[9].mxu1  ;;  %v558_v37 = vsel %vm277_vm2, %v552_v35, -inf }
 0x297   : > { %559 = vmax.xlane.f32.xlu0 %v558_v37  ;;  %v555_v38 = vpop.f32.mrb[10].mxu1 }
 0x298   : > { %449 = vrot.lane.b32.xlu1 %v1372_v10, %s1183_s11  ;;  %v928_v39 = vpop.f32.mrb[11].mxu1  ;;  %s1104_s11 = scalar_lea.vmem %s1103_s10, 128 }
 0x299   : > { %p1106_p13 = scmp.lt.s32.totalorder %s1104_s11, %s1098_s9 }
 0x29b   : > { %p1107_p3 = por %p1106_p13, %p1105_p10 }
 0x29d   : > { %v671_v40 = vpop.f32.mrb[12].mxu1  ;;  %p1108_p7 = pnand %p1107_p3, %p1101_p8 }
 0x29e   : > { %v939_v41 = vpop.f32.mrb[13].mxu1  ;;  %v677_v44 = vsel %vm277_vm2, %v671_v40, -inf }
 0x29f   : > { %v674_v42 = vpop.f32.mrb[14].mxu1 }
 0x2a0   : > { %v940_v43 = vpop.f32.mrb[15].mxu1 }
 0x2ad   : > { %334 = vrot.lane.b32.xlu0 %v1372_v10, %s1184_s27 }
 0x2b1   : > { %687 = vrot.lane.b32.xlu0 %v1372_v10, %s1185_s28 }
 0x2bc   : > { %678 = vmax.xlane.f32.xlu1 %v677_v44 }
 0x2cd   : > { %568 = vrot.lane.b32.xlu1 %v1372_v10, %s1186_s29 }
 0x314   : > { %v326_v45 = vpop.xlane.xlu1 %325 }
 0x315   : > { %v327_v46 = vsub.f32 %v318_v25, %v326_v45 }
 0x317   : > { %v328_v47 = vmul.f32 1.442695, %v327_v46 }
 0x318   : > { %v450_v57 = vpop.permute.xlu1 %449 }
 0x319   : > { %1024 = vpow2.f32 %v328_v47  ;;  %v455_v61 = vsel %vm339_vm3, %v450_v57, 0 }
 0x31c   : > { %v441_v48 = vpop.xlane.xlu0 %440 }
 0x31d   : > { %v442_v49 = vsub.f32 %v433_v30, %v441_v48 }
 0x31f   : > { %v443_v50 = vmul.f32 1.442695, %v442_v49 }
 0x321   : > { %1026 = vpow2.f32 %v443_v50 }
 0x323   : > { %v1025_v54 = vpop.eup %1024 }
 0x324   : > { %v560_v51 = vpop.xlane.xlu0 %559  ;;  %v333_v59 = vpack.c.bf16 %v1025_v54, %v1025_v54  ;;  %v330_v62 = vsel %vm277_vm2, %v1025_v54, 0.0 }
 0x325   : > { %v561_v52 = vsub.f32 %v552_v35, %v560_v51 }
 0x327   : > { %v562_v53 = vmul.f32 1.442695, %v561_v52 }
 0x328   : > { %v335_v55 = vpop.permute.xlu0 %334 }
 0x329   : > { %1028 = vpow2.f32 %v562_v53  ;;  %v341_v56 = vsel %vm339_vm3, %v335_v55, 0 }
 0x32a   : > { %906 = vmatpush3.bf16.msra.mxu0 %v341_v56 }
 0x32b   : > { %v1027_v58 = vpop.eup %1026  ;;  %917 = vmatprep.subr.bf16.mxu0 %v1174_v0 }
 0x32c   : > { %v445_v60 = vsel %vm277_vm2, %v1027_v58, 0.0  ;;  %v448_v1 = vpack.c.bf16 %v1027_v58, %v1027_v58  ;;  %v688_v8 = vpop.permute.xlu0 %687 }
 0x32d   : > { %446 = vadd.xlane.f32.xlu1 %v445_v60  ;;  %908 = vmatmul.mubr.msk.bf16.vlgmr.msra.gmra.mrb[4].mxu0 %vm277_vm2, %v333_v59  ;;  %v693_v10 = vsel %vm339_vm3, %v688_v8, 0 }
 0x32e   : > { %918 = vmatpush3.bf16.msra.mxu0 %v455_v61  ;;  %919 = vmatprep.mubr.msk.bf16.mxu0 %vm1175_vm0, %v1174_v0 }
 0x32f   : > { %929 = vmatprep.subr.bf16.mxu0 %v1174_v0 }
 0x331   : > { %331 = vadd.xlane.f32.xlu1 %v330_v62 }
 0x333   : > { %v1029_v63 = vpop.eup %1028 }
 0x334   : > { %v564_v2 = vsel %vm277_vm2, %v1029_v63, 0.0  ;;  %v567_v9 = vpack.c.bf16 %v1029_v63, %v1029_v63 }
 0x335   : > { %565 = vadd.xlane.f32.xlu0 %v564_v2  ;;  %920 = vmatmul.mubr.msk.bf16.vlgmr.msra.gmra.mrb[8].mxu0 %vm277_vm2, %v448_v1 }
 0x336   : > { %931 = vmatprep.mubr.msk.bf16.mxu0 %vm1175_vm0, %v1174_v0 }
 0x349   : > { %v679_v3 = vpop.xlane.xlu1 %678 }
 0x34a   : > { %v680_v4 = vsub.f32 %v671_v40, %v679_v3 }
 0x34c   : > { %v681_v5 = vmul.f32 1.442695, %v680_v4 }
 0x34d   : > { %v569_v6 = vpop.permute.xlu1 %568 }
 0x34e   : > { %1030 = vpow2.f32 %v681_v5  ;;  %v574_v7 = vsel %vm339_vm3, %v569_v6, 0 }
 0x34f   : > { %930 = vmatpush3.bf16.msra.mxu0 %v574_v7 }
 0x350   : > { %941 = vmatprep.subr.bf16.mxu0 %v1174_v0 }
 0x352   : > { %932 = vmatmul.mubr.msk.bf16.vlgmr.msra.gmra.mrb[12].mxu0 %vm277_vm2, %v567_v9 }
 0x353   : > { %942 = vmatpush3.bf16.msra.mxu0 %v693_v10  ;;  %943 = vmatprep.mubr.msk.bf16.mxu0 %vm1175_vm0, %v1174_v0 }
 0x358   : > { %v1031_v11 = vpop.eup %1030 }
 0x359   : > { %v683_v12 = vsel %vm277_vm2, %v1031_v11, 0.0  ;;  %v686_v13 = vpack.c.bf16 %v1031_v11, %v1031_v11 }
 0x35a   : > { %684 = vadd.xlane.f32.xlu0 %v683_v12 }
 0x35b   : > { %944 = vmatmul.mubr.msk.bf16.vlgmr.msra.gmra.mrb[16].mxu0 %vm277_vm2, %v686_v13 }
 0x3ba   : > { %v447_v14 = vpop.xlane.xlu1 %446 }
 0x3be   : > { %v332_v15 = vpop.xlane.xlu1 %331 }
 0x3bf   : > { %1032 = vrcp.f32 %v332_v15 }
 0x3c0   : > { %1034 = vrcp.f32 %v447_v14 }
 0x3c2   : > { %v566_v29 = vpop.xlane.xlu0 %565 }
 0x3c3   : > { %1036 = vrcp.f32 %v566_v29 }
 0x3c9   : > { %v1033_v16 = vpop.eup %1032 }
 0x3ca   : > { %v1035_v22 = vpop.eup %1034 }
 0x3cd   : > { %v1037_v31 = vpop.eup %1036 }
 0x3e7   : > { %v685_v30 = vpop.xlane.xlu0 %684 }
 0x3e8   : > { %1038 = vrcp.f32 %v685_v30 }
 0x3f2   : > { %v1039_v38 = vpop.eup %1038 }
 0x400   : > { %v377_v17 = vpop.f32.mrb[4].mxu0 }
 0x401   : > { %v384_v18 = vmul.f32 %v1033_v16, %v377_v17  ;;  %v909_v19 = vpop.f32.mrb[5].mxu0 }
 0x402   : > { %v380_v20 = vpop.f32.mrb[6].mxu0 }
 0x403   : > { %v385_v21 = vpack.c.bf16 %v384_v18, %v384_v18  ;;  %v910_v0 = vpop.f32.mrb[7].mxu0 }
 0x405   : > { %387 = vst.msk [vmem:[%s1425_s22] sm:$0xf] %vm386_vm4, %v385_v21 }
 0x408   : > { %v491_v23 = vpop.f32.mrb[8].mxu0 }
 0x409   : > { %v498_v24 = vmul.f32 %v1035_v22, %v491_v23  ;;  %v921_v25 = vpop.f32.mrb[9].mxu0 }
 0x40a   : > { %v494_v26 = vpop.f32.mrb[10].mxu0 }
 0x40b   : > { %v869_v27 = vpack.c.bf16 %v498_v24, %v498_v24  ;;  %v922_v28 = vpop.f32.mrb[11].mxu0 }
 0x40d   : > { %503 = vrot.lane.b32.xlu0 %v869_v27, %s1187_s6 }
 0x425   : > { %v610_v32 = vpop.f32.mrb[12].mxu0 }
 0x426   : > { %v617_v33 = vmul.f32 %v1037_v31, %v610_v32  ;;  %v933_v34 = vpop.f32.mrb[13].mxu0 }
 0x427   : > { %v613_v35 = vpop.f32.mrb[14].mxu0 }
 0x428   : > { %v870_v36 = vpack.c.bf16 %v617_v33, %v617_v33  ;;  %v934_v37 = vpop.f32.mrb[15].mxu0 }
 0x42a   : > { %622 = vrot.lane.b32.xlu1 %v870_v36, %s1188_s7 }
 0x42e   : > { %v729_v39 = vpop.f32.mrb[16].mxu0 }
 0x42f   : > { %v736_v40 = vmul.f32 %v1039_v38, %v729_v39  ;;  %v945_v41 = vpop.f32.mrb[17].mxu0 }
 0x430   : > { %v732_v42 = vpop.f32.mrb[18].mxu0 }
 0x431   : > { %v871_v43 = vpack.c.bf16 %v736_v40, %v736_v40  ;;  %v946_v44 = vpop.f32.mrb[19].mxu0 }
 0x433   : > { %741 = vrot.lane.b32.xlu1 %v871_v43, %s1189_s18 }
 0x47f   : > { %v504_v45 = vpop.permute.xlu0 %503 }
 0x480   : > { %507 = vst.msk [vmem:[%s1425_s22] sm:$0xf] %vm506_vm5, %v504_v45 }
 0x49c   : > { %v623_v46 = vpop.permute.xlu1 %622 }
 0x49d   : > { %626 = vst.msk [vmem:[%s1425_s22] sm:$0xf] %vm625_vm6, %v623_v46 }
 0x4a5   : > { %v742_v47 = vpop.permute.xlu1 %741 }
 0x4a6   : > { %745 = vst.msk [vmem:[%s1425_s22] sm:$0xf] %vm744_vm7, %v742_v47 }
 0x4a7   : > { %1111 = shalt.err (!%p1108_p7)
}
 0x4a8   : > { %s1112_s30 = scalar_lea.hbm %s1435_s5, 64  ;;  %s1116_s29 = scalar_lea.hbm %s1483_s3, 128 }
 0x4a9   : > { %p1113_p9 = scmp.ne.s32.totalorder %s1435_s5, %s1112_s30  ;;  %p1117_p0 = scmp.lt.u32.totalorder %s1435_s5, %s1483_s3 }
 0x4aa   : > { %p1118_p1 = scmp.lt.u32.totalorder %s1116_s29, %s1112_s30  ;;  %p1120_p4 = scmp.lt.u32.totalorder %s1112_s30, %s1435_s5 }
 0x4ab   : > { %p1114_p2 = pnand %p1113_p9, %p1302_p12 }
 0x4ac   : > { %p1119_p11 = por %p1118_p1, %p1117_p0 }
 0x4ad   : > { %p1115_p5 = pneg %p1114_p2 }
 0x4ae   : > { %p1121_p6 = por %p1120_p4, %p1119_p11 }
 0x4b0   : > { %p1122_p8 = pnand %p1121_p6, %p1115_p5 }
 0x4b2   : > { %1125 = shalt.err (!%p1122_p8)
}
 0x4b3   : > { %953 = dma.vmem_to_hbm [thread:$0]  (%p1302_p12), %s1437_s4, 64, %s1435_s5, %s747_s8  }
 0x4b4 PF: > { %s772_s6 = sand.u32 1, %s1156_s12   ;;  %p1498_p10 = scmp.ne.s32.totalorder %s1488_s19, 0 }
 0x4b5   : > { %p1499_p13 = scmp.ge.s32.totalorder %s1168_s15, 2  ;;  %s773_s7 = scalar_lea.sflag [#allocation4], %s772_s6 }
 0x4b7   : > { %p964_p3 = pnand %p1499_p13, %p1498_p10 }
 0x4b9   : > { %1151 = dma.done.wait (!%p964_p3), %s773_s7, 64  }
 0x4ba   : > { %1153 = vsyncadd (!%p964_p3), %s773_s7, 4294967232  ;;  %p17_p7 = scmp.ge.s32.totalorder %s1267_s24, 4   ;;  %s1500_s12 = smov %s1160_s13 }
 0x4bb   : > { %s1501_s13 = smov %s1164_s14  ;;  %s1502_s14 = smov %s1298_s17 }
 0x4bc   : > { %s1503_s15 = smov %s1267_s24  ;;  %19 = sbr.rel (!%p17_p7) target bundleno = 6 (0x6), region = 81 }
 0x4c3   :  { %778 = vsyncpa [#allocation3], 1 }
 0x4c4   :  { %780 = vsyncpa [#allocation3 + $0x1], 1 }
 0x4c5   :  { %781 = vsyncpa [#allocation6], 1 }
 0x4c6   :  { %782 = vsyncpa [#allocation4], 1 }
 0x4c7   :  { %784 = vsyncpa [#allocation4 + $0x1], 1 }

</bundles_post_ra>
